<compile_context>
chip_gen: v5e
topology: v5e:2x2
jax: 0.10.0
libtpu: 0.0.40
codegen_flags: <defaults>
</compile_context>

<pallas_src>
import jax
import jax.numpy as jnp
from jax.experimental import pallas as pl
from jax.experimental.pallas import tpu as pltpu


def _rxa_kernel(x_ref, w_ref, o_ref):
    # x_ref: (B, K, L)   lane = c*2 + i                (L = lane block)
    # w_ref: (2, K, L)   w[o, t, lane] = W[c, o, i, t]
    # o_ref: (2, B, L)   partial[o, b, lane] = sum_t x[b, t, lane] * w[o, t, lane]
    x = x_ref[...]                                     # (B, K, L), f32, VPU path
    o_ref[0] = jnp.sum(x * w_ref[0][None, :, :], axis=1)   # (B, L)
    o_ref[1] = jnp.sum(x * w_ref[1][None, :, :], axis=1)   # (B, L)


def _pick_lane_block(total_lanes, max_lanes=2048):
    """Largest lane block (multiple of 128) evenly dividing total_lanes,
    capped at max_lanes; otherwise a single full-width block (always legal)."""
    if total_lanes <= max_lanes or total_lanes % 128 != 0:
        return total_lanes
    for lb in range(max_lanes, 127, -128):
        if total_lanes % lb == 0:
            return lb
    return total_lanes


def rxa_filter_ensemble(x, weights):
    """x: (B, n_seq, C, 2) f32; weights: (C, 2, 2, K) f32 (Conv1d weights).

    Returns (B, C, 2) f32, matching RxaFilterEnsembleTorch.forward.
    """
    B, n_seq, C, two = x.shape
    assert two == 2
    K = weights.shape[-1]
    assert n_seq >= K, "need n_seq >= seq_size (valid conv, position 0)"

    lanes = 2 * C
    # Free, contiguous reshape (trailing (C, 2) axes are contiguous) -- no
    # HBM transpose of the input; the slice only touches the K useful steps.
    x_in = x[:, :K, :, :].reshape(B, K, lanes).astype(jnp.float32)
    # Small weight tensor only: w_in[o, t, c*2 + i] = W[c, o, i, t].
    w_in = jnp.transpose(weights, (1, 3, 0, 2)).reshape(2, K, lanes)
    w_in = w_in.astype(jnp.float32)

    L = _pick_lane_block(lanes)
    grid = (lanes // L,)

    cost = pl.CostEstimate(
        flops=8 * B * C * K,                       # K mul + K add per partial
        transcendentals=0,
        bytes_accessed=4 * (B * K * lanes + 2 * K * lanes + 2 * B * lanes),
    )

    partial = pl.pallas_call(
        _rxa_kernel,
        out_shape=jax.ShapeDtypeStruct((2, B, lanes), jnp.float32),
        grid_spec=pltpu.PrefetchScalarGridSpec(
            num_scalar_prefetch=0,
            grid=grid,
            in_specs=[
                pl.BlockSpec((B, K, L), lambda j: (0, 0, j)),
                pl.BlockSpec((2, K, L), lambda j: (0, 0, j)),
            ],
            out_specs=pl.BlockSpec((2, B, L), lambda j: (0, 0, j)),
        ),
        compiler_params=pltpu.CompilerParams(
            dimension_semantics=("parallel",),
        ),
        cost_estimate=cost,
    )(x_in, w_in)                                   # (2, B, 2C)

    # Tiny epilogue (4*B*C floats): sum over input tap i, move o to the back.
    res = partial.reshape(2, B, C, 2).sum(axis=-1)  # (2, B, C)
    return jnp.transpose(res, (1, 2, 0))            # (B, C, 2)


def _reference(x, weights):
    # Pure-JAX reference of the PyTorch forward (output position 0 only).
    K = weights.shape[-1]
    xw = x[:, :K, :, :]                             # (B, K, C, 2)
    return jnp.einsum("btci,coit->bco", xw, weights)


if __name__ == "__main__":
    n_channels = 4
    seq_size = 8
    batch = 2
    n_seq = seq_size  # only the first seq_size steps matter

    key = jax.random.PRNGKey(0)
    kx, kw = jax.random.split(key)

    x = jax.random.normal(kx, (batch, n_seq, n_channels, 2), dtype=jnp.float32)
    # Deterministic synthetic Conv1d weights: (C, out=2, in=2, K)
    weights = jax.random.normal(
        kw, (n_channels, 2, 2, seq_size), dtype=jnp.float32
    ) * 0.1

    out = rxa_filter_ensemble(x, weights)
    out = jax.block_until_ready(out)

    ref = _reference(x, weights)
    assert out.shape == (batch, n_channels, 2)
    assert jnp.allclose(out, ref, atol=1e-5, rtol=1e-5)

    print("KERNEL_OK")
</pallas_src>

<mosaic_0001>
module attributes {stable_mosaic.version = 11 : i64} {
  func.func @_rxa_kernel(%arg0: i32, %arg1: memref<2x8x8xf32, #tpu.memory_space<vmem>>, %arg2: memref<2x8x8xf32, #tpu.memory_space<vmem>>, %arg3: memref<2x2x8xf32, #tpu.memory_space<vmem>>) attributes {dimension_semantics = [#tpu.dimension_semantics<parallel>], iteration_bounds = array<i64: 1>, scalar_prefetch = 0 : i64, scratch_operands = 0 : i64, tpu.core_type = #tpu.core_type<tc>, window_params = [{transform_indices = @transform_0, window_bounds = array<i64: 2, 8, 8>}, {transform_indices = @transform_1, window_bounds = array<i64: 2, 8, 8>}, {transform_indices = @transform_2, window_bounds = array<i64: 2, 2, 8>}]} {
    %c0 = arith.constant 0 : index
    %c0_0 = arith.constant 0 : index
    %c0_1 = arith.constant 0 : index
    %0 = vector.load %arg1[%c0, %c0_0, %c0_1] : memref<2x8x8xf32, #tpu.memory_space<vmem>>, vector<2x8x8xf32>
    %c0_2 = arith.constant 0 : index
    %c0_3 = arith.constant 0 : index
    %c0_4 = arith.constant 0 : index
    %1 = vector.load %arg2[%c0_2, %c0_3, %c0_4] : memref<2x8x8xf32, #tpu.memory_space<vmem>>, vector<1x8x8xf32>
    %2 = vector.shape_cast %1 : vector<1x8x8xf32> to vector<8x8xf32>
    %3 = vector.shape_cast %2 : vector<8x8xf32> to vector<1x8x8xf32>
    %4 = vector.broadcast %3 : vector<1x8x8xf32> to vector<2x8x8xf32>
    %5 = arith.mulf %0, %4 : vector<2x8x8xf32>
    %cst = arith.constant dense<0.000000e+00> : vector<2x8xf32>
    %6 = vector.multi_reduction <add>, %5, %cst [1] : vector<2x8x8xf32> to vector<2x8xf32>
    %c0_5 = arith.constant 0 : index
    %c0_6 = arith.constant 0 : index
    %c0_7 = arith.constant 0 : index
    %7 = vector.load %arg3[%c0_5, %c0_6, %c0_7] : memref<2x2x8xf32, #tpu.memory_space<vmem>>, vector<1x2x8xf32>
    %8 = vector.shape_cast %7 : vector<1x2x8xf32> to vector<2x8xf32>
    %9 = vector.shape_cast %6 : vector<2x8xf32> to vector<1x2x8xf32>
    tpu.vector_store %arg3[%c0_5, %c0_6, %c0_7], %9 {strides = array<i32>} : memref<2x2x8xf32, #tpu.memory_space<vmem>>, vector<1x2x8xf32>,
    %c1 = arith.constant 1 : index
    %c0_8 = arith.constant 0 : index
    %c0_9 = arith.constant 0 : index
    %10 = vector.load %arg2[%c1, %c0_8, %c0_9] : memref<2x8x8xf32, #tpu.memory_space<vmem>>, vector<1x8x8xf32>
    %11 = vector.shape_cast %10 : vector<1x8x8xf32> to vector<8x8xf32>
    %12 = vector.shape_cast %11 : vector<8x8xf32> to vector<1x8x8xf32>
    %13 = vector.broadcast %12 : vector<1x8x8xf32> to vector<2x8x8xf32>
    %14 = arith.mulf %0, %13 : vector<2x8x8xf32>
    %cst_10 = arith.constant dense<0.000000e+00> : vector<2x8xf32>
    %15 = vector.multi_reduction <add>, %14, %cst_10 [1] : vector<2x8x8xf32> to vector<2x8xf32>
    %c1_11 = arith.constant 1 : index
    %c0_12 = arith.constant 0 : index
    %c0_13 = arith.constant 0 : index
    %16 = vector.load %arg3[%c1_11, %c0_12, %c0_13] : memref<2x2x8xf32, #tpu.memory_space<vmem>>, vector<1x2x8xf32>
    %17 = vector.shape_cast %16 : vector<1x2x8xf32> to vector<2x8xf32>
    %18 = vector.shape_cast %15 : vector<2x8xf32> to vector<1x2x8xf32>
    tpu.vector_store %arg3[%c1_11, %c0_12, %c0_13], %18 {strides = array<i32>} : memref<2x2x8xf32, #tpu.memory_space<vmem>>, vector<1x2x8xf32>,
    return
  }
  func.func @transform_0(%arg0: i32) -> (i32, i32, i32) {
    %c0_i32 = arith.constant 0 : i32
    %c0_i32_0 = arith.constant 0 : i32
    %c0_i32_1 = arith.constant 0 : i32
    return %c0_i32, %c0_i32_0, %arg0 : i32, i32, i32
  }
  func.func @transform_1(%arg0: i32) -> (i32, i32, i32) {
    %c0_i32 = arith.constant 0 : i32
    %c0_i32_0 = arith.constant 0 : i32
    %c0_i32_1 = arith.constant 0 : i32
    return %c0_i32, %c0_i32_0, %arg0 : i32, i32, i32
  }
  func.func @transform_2(%arg0: i32) -> (i32, i32, i32) {
    %c0_i32 = arith.constant 0 : i32
    %c0_i32_0 = arith.constant 0 : i32
    %c0_i32_1 = arith.constant 0 : i32
    return %c0_i32, %c0_i32_0, %arg0 : i32, i32, i32
  }
}

</mosaic_0001>

<bundles_post_ra>
// kernel: tpu_custom_call.1
= control target key start
LH: loop header
LB: loop body
LE: loop exit
PB: predicated region body
PF: predicated region fallthrough
CT: control target
= control target key end

     0   :  { %7 = vsyncpa [#allocation3], 0  ;;  %s231_s0 = inlined_call_operand.hbm [shape: f32[2,8,8], index: 0, kind: input, shape index: {}]   ;;  %s232_s1 = inlined_call_operand.hbm [shape: f32[2,8,8], index: 1, kind: input, shape index: {}]   ;;  %s233_s2 = inlined_call_operand.hbm [shape: f32[2,2,8], index: 2, kind: output, shape index: {}]  }
   0x1   :  { %8 = vsyncpa [#allocation6], 0 }
   0x2   :  { %9 = vsyncpa [#allocation4], 0  ;;  %s14_s11 = sshll.u32 %s231_s0, 4  ;;  %s200_s12 = smov [#allocation2]   ;;  %s15_s11 = int_to_ptr.hbm [resolvable:$true] %s14_s11 }
   0x3   :  { %s16_s13 = sshll.u32 %s200_s12, 4  ;;  %s27_s16 = sshll.u32 %s232_s1, 4  ;;  %s17_s13 = int_to_ptr.vmem [resolvable:$true] %s16_s13  ;;  %s28_s16 = int_to_ptr.hbm [resolvable:$true] %s27_s16 }
   0x4   :  { %s201_s17 = smov 128   ;;  %s202_s18 = smov 8  }
   0x5   :  { %22 = dma.hbm_to_vmem [thread:$0]  %s15_s11, 256, %s17_s13, [#allocation3], %s201_s17, %s201_s17, %s202_s18  }
   0x6   :  { %s203_s19 = smov [#allocation5]  }
   0x7   :  { %s29_s20 = sshll.u32 %s203_s19, 4  ;;  %s30_s20 = int_to_ptr.vmem [resolvable:$true] %s29_s20 }
   0x8   :  { %35 = dma.hbm_to_vmem [thread:$0]  %s28_s16, 256, %s30_s20, [#allocation6], %s201_s17, %s201_s17, %s202_s18  }
   0x9   :  { %194 = dma.done.wait [#allocation3], 256  }
   0xa   :  { %195 = vsyncadd [#allocation3], 4294967040 }
   0xb   :  { %196 = dma.done.wait [#allocation6], 256  }
   0xc   :  { %197 = vsyncadd [#allocation6], 4294967040  ;;  %v44_v0 = vld [vmem:[#allocation2] sm:$0xff]  ;;  %v45_v1 = vld [vmem:[#allocation2 + $0x8] sm:$0xff]  ;;  %vm49_vm0 = vcmask 64512   ;;  %s204_s0 = smov [#allocation7]  }
   0xd   :  { %v46_v2 = vld [vmem:[#allocation5] sm:$0xff]  ;;  %v72_v5 = vld [vmem:[#allocation5 + $0x8] sm:$0xff]  ;;  %s99_s1 = sshll.u32 %s204_s0, 4  ;;  %s101_s23 = sshll.u32 %s233_s2, 4  ;;  %vm66_vm1 = vcmask 1041409   ;;  %vm69_vm2 = vcmask 58368   ;;  %s100_s1 = int_to_ptr.vmem [resolvable:$true] %s99_s1  ;;  %s102_s23 = int_to_ptr.hbm [resolvable:$true] %s101_s23 }
   0xe   :  { %v47_v3 = vmul.f32 %v46_v2, %v44_v0  ;;  %v48_v4 = vmul.f32 %v46_v2, %v45_v1  ;;  %v73_v6 = vmul.f32 %v72_v5, %v44_v0  ;;  %v74_v7 = vmul.f32 %v72_v5, %v45_v1  ;;  %s205_s24 = smov 32   ;;  %s206_s25 = smov 2  }
  0x10   :  { %v50_v8 = vsel %vm49_vm0, %v47_v3, 0.0  ;;  %v57_v9 = vsel %vm49_vm0, %v48_v4, 0.0  ;;  %v75_v12 = vsel %vm49_vm0, %v73_v6, 0.0  ;;  %v82_v13 = vsel %vm49_vm0, %v74_v7, 0.0 }
  0x11   :  { %v51_v10 = vrot.slane %v50_v8, 4  ;;  %v58_v11 = vrot.slane %v57_v9, 4  ;;  %v76_v14 = vrot.slane %v75_v12, 4  ;;  %v83_v15 = vrot.slane %v82_v13, 4 }
  0x13   :  { %v52_v16 = vadd.f32 %v51_v10, %v50_v8  ;;  %v59_v17 = vadd.f32 %v58_v11, %v57_v9  ;;  %v77_v18 = vadd.f32 %v76_v14, %v75_v12  ;;  %v84_v19 = vadd.f32 %v83_v15, %v82_v13 }
  0x15   :  { %v53_v20 = vrot.slane %v52_v16, 2  ;;  %v60_v21 = vrot.slane %v59_v17, 2  ;;  %v78_v22 = vrot.slane %v77_v18, 2  ;;  %v85_v23 = vrot.slane %v84_v19, 2 }
  0x17   :  { %v54_v24 = vadd.f32 %v53_v20, %v52_v16  ;;  %v61_v25 = vadd.f32 %v60_v21, %v59_v17  ;;  %v79_v26 = vadd.f32 %v78_v22, %v77_v18  ;;  %v86_v27 = vadd.f32 %v85_v23, %v84_v19 }
  0x19   :  { %v55_v28 = vrot.slane %v54_v24, 1  ;;  %v62_v29 = vrot.slane %v61_v25, 1  ;;  %v80_v30 = vrot.slane %v79_v26, 1  ;;  %v87_v31 = vrot.slane %v86_v27, 1 }
  0x1b   :  { %v56_v32 = vadd.f32 %v55_v28, %v54_v24  ;;  %v63_v33 = vadd.f32 %v62_v29, %v61_v25  ;;  %v81_v34 = vadd.f32 %v80_v30, %v79_v26  ;;  %v88_v35 = vadd.f32 %v87_v31, %v86_v27 }
  0x1d   :  { %v67_v36 = vsel %vm66_vm1, %v63_v33, %v56_v32  ;;  %v91_v37 = vsel %vm66_vm1, %v88_v35, %v81_v34 }
  0x1e   :  { %70 = vst.msk [vmem:[#allocation7] sm:$0x3] %vm69_vm2, %v67_v36 }
  0x1f   :  { %94 = vst.msk [vmem:[#allocation7 + $0x2] sm:$0x3] %vm69_vm2, %v91_v37 }
  0x20   :  { %107 = dma.vmem_to_hbm [thread:$0]  %s100_s1, 64, %s102_s23, [#allocation4], %s205_s24, %s205_s24, %s206_s25  }
  0x21   :  { %198 = dma.done.wait [#allocation4], 64  }
  0x22   :  { %199 = vsyncadd [#allocation4], 4294967232 }
  0x23   :  { %112 = vsyncpa [#allocation3], 1 }
  0x24   :  { %113 = vsyncpa [#allocation6], 1 }
  0x25   :  { %114 = vsyncpa [#allocation4], 1 }

</bundles_post_ra>
